<compile_context>
chip_gen: v5e
topology: v5e:2x2
jax: 0.10.0
libtpu: 0.0.40
codegen_flags: <defaults>
</compile_context>

<pallas_src>
import functools

import jax
import jax.numpy as jnp
from jax.experimental import pallas as pl
from jax.experimental.pallas import tpu as pltpu


LANE = 128
SUBLANE = 8
_VMEM_BUDGET = 48 * 1024 * 1024  # cap: leaves headroom inside v7x's 64 MiB physical VMEM


def _round_up(n, m):
    return ((n + m - 1) // m) * m


def _elu(x):
    # ELU(alpha=1). Clamp the exp argument so the discarded branch never overflows.
    return jnp.where(x > 0, x, jnp.exp(jnp.minimum(x, 0)) - 1)


def _default_act_dtype():
    """bf16 elementwise epilogue on v6e/v7x (packed bf16 VPU/EUP); f32 elsewhere."""
    try:
        kind = jax.devices()[0].device_kind.lower()
    except Exception:
        return jnp.float32
    if "v6" in kind or "v7" in kind or "7x" in kind:
        return jnp.bfloat16
    return jnp.float32


def _probnn_kernel(x_ref, w1_ref, b1_ref, w2_ref, b2_ref, w3_ref, b3_ref, o_ref,
                   *, act_dtype):
    # x arrives pre-cast to bf16 from the wrapper; all matmuls accumulate in f32.
    x = x_ref[...]

    # Layer 1: Linear (bf16 MXU, f32 accum) -> bias + ELU in act_dtype.
    h1 = jnp.dot(x, w1_ref[...], preferred_element_type=jnp.float32)
    h1 = _elu(h1.astype(act_dtype) + b1_ref[...])

    # Layer 2.
    h2 = jnp.dot(h1.astype(jnp.bfloat16), w2_ref[...],
                 preferred_element_type=jnp.float32)
    h2 = _elu(h2.astype(act_dtype) + b2_ref[...])

    # Layer 3 + softmax. b3's padded lanes hold -1e30, so padded logits underflow
    # to exp(...) == 0 and drop out of the softmax sum -- no in-kernel mask needed.
    logits = jnp.dot(h2.astype(jnp.bfloat16), w3_ref[...],
                     preferred_element_type=jnp.float32) + b3_ref[...]

    m = jnp.max(logits, axis=-1, keepdims=True)
    e = jnp.exp(logits - m)
    denom = jnp.sum(e, axis=-1, keepdims=True)
    inv = pl.reciprocal(denom, approx=True)      # EUP slot, ~free vs VPU divide
    o_ref[...] = (e * inv).astype(o_ref.dtype)


def prepare_params(params, act_dtype=None):
    """One-time pad/cast of weights & biases (hoisted out of the per-forward path).

    Zero-padding of weight rows/cols and of b1/b2 is exact: padded hidden lanes
    produce ELU(0)=0 and padded contraction rows contribute nothing. b3's padded
    lanes are filled with -1e30 so they vanish in the softmax.
    """
    if act_dtype is None:
        act_dtype = _default_act_dtype()

    w1, b1 = params["w1"], params["b1"]
    w2, b2 = params["w2"], params["b2"]
    w3, b3 = params["w3"], params["b3"]

    input_size, hidden_size = w1.shape
    output_size = w3.shape[1]
    in_p = _round_up(input_size, LANE)
    h_p = _round_up(hidden_size, LANE)
    out_p = _round_up(output_size, LANE)

    def pad2(a, rows, cols, value=0.0):
        return jnp.pad(a, ((0, rows - a.shape[0]), (0, cols - a.shape[1])),
                       constant_values=value)

    padded = {
        "w1": pad2(w1.astype(jnp.float32), in_p, h_p).astype(jnp.bfloat16),
        "w2": pad2(w2.astype(jnp.float32), h_p, h_p).astype(jnp.bfloat16),
        "w3": pad2(w3.astype(jnp.float32), h_p, out_p).astype(jnp.bfloat16),
        "b1": pad2(b1.astype(jnp.float32), 1, h_p).astype(act_dtype),
        "b2": pad2(b2.astype(jnp.float32), 1, h_p).astype(act_dtype),
        "b3": pad2(b3.astype(jnp.float32), 1, out_p, value=-1e30),
    }
    meta = dict(input_size=input_size, hidden_size=hidden_size,
                output_size=output_size, in_p=in_p, h_p=h_p, out_p=out_p,
                act_dtype=act_dtype)
    return padded, meta


def _pick_tile_and_vmem(batch, meta):
    """Derive batch tile and vmem_limit from an explicit VMEM footprint model."""
    in_p, h_p, out_p = meta["in_p"], meta["h_p"], meta["out_p"]
    act_bytes = jnp.dtype(meta["act_dtype"]).itemsize

    # Single-buffered (pl.Buffered(1)) resident weights + biases.
    weight_bytes = ((in_p * h_p + h_p * h_p + h_p * out_p) * 2
                    + 2 * h_p * act_bytes + out_p * 4)
    # Per-batch-row cost: double-buffered bf16 x tile + double-buffered f32 out tile
    # + a generous allowance for in-flight intermediates (h1/h2/logits/exp).
    per_row = 2 * in_p * 2 + 2 * out_p * 4 + 2 * h_p * 4 + 2 * out_p * 4

    # TODO(synk): add an "arbitrary" K grid axis over in_p when the weights alone
    # exceed the VMEM budget (very large input_size); not needed at these sizes.
    avail = max(_VMEM_BUDGET - weight_bytes, SUBLANE * per_row)
    tb_max = max(SUBLANE, min(1024, (avail // per_row) // SUBLANE * SUBLANE))

    b8 = _round_up(batch, SUBLANE)
    if b8 <= SUBLANE:
        tb = SUBLANE                                   # single tiny tile
    elif b8 <= 2 * tb_max:
        # Exactly 2 tiles: minimal batch padding AND the parallel grid axis can
        # shard across both v7x TensorCores.
        tb = _round_up(pl.cdiv(b8, 2), SUBLANE)
    else:
        # Large batch: power-of-two tile minimizing padding (ties -> larger tile).
        best = None
        for cand in (1024, 512, 256, 128):
            if cand > tb_max:
                continue
            padded_rows = pl.cdiv(b8, cand) * cand
            if best is None or padded_rows < best[0]:
                best = (padded_rows, cand)
        tb = best[1] if best is not None else tb_max

    grid = pl.cdiv(b8, tb)
    b_pad = grid * tb
    vmem_limit = min(_VMEM_BUDGET,
                     max(16 << 20,
                         _round_up(weight_bytes + tb * per_row + (4 << 20), 1 << 20)))
    return tb, b_pad, grid, vmem_limit


def probnn_forward(x, padded, meta):
    """Fused ProbNN forward: one lane-padded, batch-tiled Pallas kernel.

    x: (batch, input_size) float32
    padded/meta: output of prepare_params()
    Returns: (batch, output_size) float32 softmax probabilities.
    """
    batch, input_size = x.shape
    in_p, h_p, out_p = meta["in_p"], meta["h_p"], meta["out_p"]
    out_size = meta["output_size"]

    tb, b_pad, grid, vmem_limit = _pick_tile_and_vmem(batch, meta)

    # Cast x to bf16 in the wrapper: halves the input DMA stream + x double-buffer.
    x_p = jnp.pad(x.astype(jnp.bfloat16),
                  ((0, b_pad - batch), (0, in_p - input_size)))

    # VMEM-resident operands: constant index_map, single-buffered (never re-fetched).
    def resident(shape):
        return pl.BlockSpec(shape, lambda i: (0, 0), pipeline_mode=pl.Buffered(1))

    out_padded = pl.pallas_call(
        functools.partial(_probnn_kernel, act_dtype=meta["act_dtype"]),
        out_shape=jax.ShapeDtypeStruct((b_pad, out_p), jnp.float32),
        grid=(grid,),
        in_specs=[
            pl.BlockSpec((tb, in_p), lambda i: (i, 0)),   # x: tiled along batch
            resident((in_p, h_p)), resident((1, h_p)),    # w1, b1
            resident((h_p, h_p)), resident((1, h_p)),     # w2, b2
            resident((h_p, out_p)), resident((1, out_p)), # w3, b3
        ],
        out_specs=pl.BlockSpec((tb, out_p), lambda i: (i, 0)),
        compiler_params=pltpu.CompilerParams(
            dimension_semantics=("parallel",),
            vmem_limit_bytes=vmem_limit,
        ),
    )(x_p, padded["w1"], padded["b1"], padded["w2"], padded["b2"],
      padded["w3"], padded["b3"])

    return out_padded[:batch, :out_size]


def init_params(key, input_size, hidden_size, output_size):
    """Deterministic parameter init (uniform, PyTorch-style Linear init scale)."""
    ks = jax.random.split(key, 6)

    def linear(kw, kb, fan_in, fan_out):
        bound = 1.0 / jnp.sqrt(jnp.float32(fan_in))
        w = jax.random.uniform(kw, (fan_in, fan_out), jnp.float32, -bound, bound)
        b = jax.random.uniform(kb, (1, fan_out), jnp.float32, -bound, bound)
        return w, b

    w1, b1 = linear(ks[0], ks[1], input_size, hidden_size)
    w2, b2 = linear(ks[2], ks[3], hidden_size, hidden_size)
    w3, b3 = linear(ks[4], ks[5], hidden_size, output_size)
    return {"w1": w1, "b1": b1, "w2": w2, "b2": b2, "w3": w3, "b3": b3}


def probnn_reference(x, p):
    h1 = _elu(x @ p["w1"] + p["b1"])
    h2 = _elu(h1 @ p["w2"] + p["b2"])
    logits = h2 @ p["w3"] + p["b3"]
    return jax.nn.softmax(logits, axis=-1)


if __name__ == "__main__":
    key = jax.random.PRNGKey(0)
    k_x, k_p = jax.random.split(key)

    batch, input_size, hidden_size, output_size = 2, 16, 32, 8
    x = jax.random.normal(k_x, (batch, input_size), jnp.float32)
    params = init_params(k_p, input_size, hidden_size, output_size)

    # One-time prep (pad + bf16 cast of weights) hoisted out of the forward path.
    padded, meta = prepare_params(params)
    fwd = jax.jit(functools.partial(probnn_forward, meta=meta))

    out = jax.block_until_ready(fwd(x, padded))

    ref = probnn_reference(x, params)
    assert out.shape == (batch, output_size)
    # bf16 MXU operands (+ bf16 epilogue on v6e/v7x) + approx reciprocal:
    # compare with loosened tolerance.
    assert jnp.allclose(out, ref, atol=2e-2, rtol=2e-2)
    # Rows of a softmax sum to ~1 (approx reciprocal introduces ~1e-4 error).
    assert jnp.allclose(jnp.sum(out, axis=-1), jnp.ones((batch,)), atol=5e-3)

    print("KERNEL_OK")
</pallas_src>

<mosaic_0001>
module attributes {stable_mosaic.version = 11 : i64} {
  func.func @_probnn_kernel(%arg0: i32, %arg1: memref<8x128xbf16, #tpu.memory_space<vmem>>, %arg2: memref<128x128xbf16, #tpu.memory_space<vmem>>, %arg3: memref<1x128xf32, #tpu.memory_space<vmem>>, %arg4: memref<128x128xbf16, #tpu.memory_space<vmem>>, %arg5: memref<1x128xf32, #tpu.memory_space<vmem>>, %arg6: memref<128x128xbf16, #tpu.memory_space<vmem>>, %arg7: memref<1x128xf32, #tpu.memory_space<vmem>>, %arg8: memref<8x128xf32, #tpu.memory_space<vmem>>) attributes {dimension_semantics = [#tpu.dimension_semantics<parallel>], iteration_bounds = array<i64: 1>, scalar_prefetch = 0 : i64, scratch_operands = 0 : i64, tpu.core_type = #tpu.core_type<tc>, window_params = [{transform_indices = @transform_0, window_bounds = array<i64: 8, 128>}, {pipeline_mode = #tpu.pipeline_mode<synchronous>, transform_indices = @transform_1, window_bounds = array<i64: 128, 128>}, {pipeline_mode = #tpu.pipeline_mode<synchronous>, transform_indices = @transform_2, window_bounds = array<i64: 1, 128>}, {pipeline_mode = #tpu.pipeline_mode<synchronous>, transform_indices = @transform_3, window_bounds = array<i64: 128, 128>}, {pipeline_mode = #tpu.pipeline_mode<synchronous>, transform_indices = @transform_4, window_bounds = array<i64: 1, 128>}, {pipeline_mode = #tpu.pipeline_mode<synchronous>, transform_indices = @transform_5, window_bounds = array<i64: 128, 128>}, {pipeline_mode = #tpu.pipeline_mode<synchronous>, transform_indices = @transform_6, window_bounds = array<i64: 1, 128>}, {transform_indices = @transform_7, window_bounds = array<i64: 8, 128>}]} {
    %c0 = arith.constant 0 : index
    %c0_0 = arith.constant 0 : index
    %0 = vector.load %arg1[%c0, %c0_0] : memref<8x128xbf16, #tpu.memory_space<vmem>>, vector<8x128xbf16>
    %c0_1 = arith.constant 0 : index
    %c0_2 = arith.constant 0 : index
    %1 = vector.load %arg2[%c0_1, %c0_2] : memref<128x128xbf16, #tpu.memory_space<vmem>>, vector<128x128xbf16>
    %cst = arith.constant dense<0.000000e+00> : vector<8x128xf32>
    %2 = tpu.matmul %0, %1, %cst {dimension_numbers = #tpu.dot_dimension_numbers<[1], [0], [0], [1], [0, 0, 1, 1], [], []>} : vector<8x128xbf16>, vector<128x128xbf16>, vector<8x128xf32> -> vector<8x128xf32>
    %c0_3 = arith.constant 0 : index
    %c0_4 = arith.constant 0 : index
    %3 = vector.load %arg3[%c0_3, %c0_4] : memref<1x128xf32, #tpu.memory_space<vmem>>, vector<1x128xf32>
    %4 = vector.broadcast %3 : vector<1x128xf32> to vector<8x128xf32>
    %5 = arith.addf %2, %4 : vector<8x128xf32>
    %cst_5 = arith.constant 0.000000e+00 : f32
    %6 = vector.broadcast %cst_5 : f32 to vector<8x128xf32>
    %7 = arith.cmpf ogt, %5, %6 : vector<8x128xf32>
    %cst_6 = arith.constant 0.000000e+00 : f32
    %8 = vector.broadcast %cst_6 : f32 to vector<8x128xf32>
    %9 = arith.minimumf %5, %8 : vector<8x128xf32>
    %10 = math.exp %9 : vector<8x128xf32>
    %cst_7 = arith.constant 1.000000e+00 : f32
    %11 = vector.broadcast %cst_7 : f32 to vector<8x128xf32>
    %12 = arith.subf %10, %11 : vector<8x128xf32>
    %13 = arith.select %7, %5, %12 : vector<8x128xi1>, vector<8x128xf32>
    %14 = arith.truncf %13 : vector<8x128xf32> to vector<8x128xbf16>
    %c0_8 = arith.constant 0 : index
    %c0_9 = arith.constant 0 : index
    %15 = vector.load %arg4[%c0_8, %c0_9] : memref<128x128xbf16, #tpu.memory_space<vmem>>, vector<128x128xbf16>
    %cst_10 = arith.constant dense<0.000000e+00> : vector<8x128xf32>
    %16 = tpu.matmul %14, %15, %cst_10 {dimension_numbers = #tpu.dot_dimension_numbers<[1], [0], [0], [1], [0, 0, 1, 1], [], []>} : vector<8x128xbf16>, vector<128x128xbf16>, vector<8x128xf32> -> vector<8x128xf32>
    %c0_11 = arith.constant 0 : index
    %c0_12 = arith.constant 0 : index
    %17 = vector.load %arg5[%c0_11, %c0_12] : memref<1x128xf32, #tpu.memory_space<vmem>>, vector<1x128xf32>
    %18 = vector.broadcast %17 : vector<1x128xf32> to vector<8x128xf32>
    %19 = arith.addf %16, %18 : vector<8x128xf32>
    %cst_13 = arith.constant 0.000000e+00 : f32
    %20 = vector.broadcast %cst_13 : f32 to vector<8x128xf32>
    %21 = arith.cmpf ogt, %19, %20 : vector<8x128xf32>
    %cst_14 = arith.constant 0.000000e+00 : f32
    %22 = vector.broadcast %cst_14 : f32 to vector<8x128xf32>
    %23 = arith.minimumf %19, %22 : vector<8x128xf32>
    %24 = math.exp %23 : vector<8x128xf32>
    %cst_15 = arith.constant 1.000000e+00 : f32
    %25 = vector.broadcast %cst_15 : f32 to vector<8x128xf32>
    %26 = arith.subf %24, %25 : vector<8x128xf32>
    %27 = arith.select %21, %19, %26 : vector<8x128xi1>, vector<8x128xf32>
    %28 = arith.truncf %27 : vector<8x128xf32> to vector<8x128xbf16>
    %c0_16 = arith.constant 0 : index
    %c0_17 = arith.constant 0 : index
    %29 = vector.load %arg6[%c0_16, %c0_17] : memref<128x128xbf16, #tpu.memory_space<vmem>>, vector<128x128xbf16>
    %cst_18 = arith.constant dense<0.000000e+00> : vector<8x128xf32>
    %30 = tpu.matmul %28, %29, %cst_18 {dimension_numbers = #tpu.dot_dimension_numbers<[1], [0], [0], [1], [0, 0, 1, 1], [], []>} : vector<8x128xbf16>, vector<128x128xbf16>, vector<8x128xf32> -> vector<8x128xf32>
    %c0_19 = arith.constant 0 : index
    %c0_20 = arith.constant 0 : index
    %31 = vector.load %arg7[%c0_19, %c0_20] : memref<1x128xf32, #tpu.memory_space<vmem>>, vector<1x128xf32>
    %32 = vector.broadcast %31 : vector<1x128xf32> to vector<8x128xf32>
    %33 = arith.addf %30, %32 : vector<8x128xf32>
    %cst_21 = arith.constant dense<0xFF800000> : vector<8xf32>
    %34 = vector.multi_reduction <maximumf>, %33, %cst_21 [1] : vector<8x128xf32> to vector<8xf32>
    %35 = vector.shape_cast %34 : vector<8xf32> to vector<8x1xf32>
    %36 = vector.broadcast %35 : vector<8x1xf32> to vector<8x128xf32>
    %37 = arith.subf %33, %36 : vector<8x128xf32>
    %38 = math.exp %37 : vector<8x128xf32>
    %cst_22 = arith.constant dense<0.000000e+00> : vector<8xf32>
    %39 = vector.multi_reduction <add>, %38, %cst_22 [1] : vector<8x128xf32> to vector<8xf32>
    %40 = vector.shape_cast %39 : vector<8xf32> to vector<8x1xf32>
    %41 = tpu.reciprocal %40 {approx = true} : vector<8x1xf32> -> vector<8x1xf32>
    %42 = vector.broadcast %41 : vector<8x1xf32> to vector<8x128xf32>
    %43 = arith.mulf %38, %42 : vector<8x128xf32>
    %c0_23 = arith.constant 0 : index
    %c0_24 = arith.constant 0 : index
    %44 = vector.load %arg8[%c0_23, %c0_24] : memref<8x128xf32, #tpu.memory_space<vmem>>, vector<8x128xf32>
    tpu.vector_store %arg8[%c0_23, %c0_24], %43 {strides = array<i32>} : memref<8x128xf32, #tpu.memory_space<vmem>>, vector<8x128xf32>,
    return
  }
  func.func @transform_0(%arg0: i32) -> (i32, i32) {
    %c0_i32 = arith.constant 0 : i32
    %c0_i32_0 = arith.constant 0 : i32
    return %arg0, %c0_i32 : i32, i32
  }
  func.func @transform_1(%arg0: i32) -> (i32, i32) {
    %c0_i32 = arith.constant 0 : i32
    %c0_i32_0 = arith.constant 0 : i32
    %c0_i32_1 = arith.constant 0 : i32
    return %c0_i32, %c0_i32_0 : i32, i32
  }
  func.func @transform_2(%arg0: i32) -> (i32, i32) {
    %c0_i32 = arith.constant 0 : i32
    %c0_i32_0 = arith.constant 0 : i32
    %c0_i32_1 = arith.constant 0 : i32
    return %c0_i32, %c0_i32_0 : i32, i32
  }
  func.func @transform_3(%arg0: i32) -> (i32, i32) {
    %c0_i32 = arith.constant 0 : i32
    %c0_i32_0 = arith.constant 0 : i32
    %c0_i32_1 = arith.constant 0 : i32
    return %c0_i32, %c0_i32_0 : i32, i32
  }
  func.func @transform_4(%arg0: i32) -> (i32, i32) {
    %c0_i32 = arith.constant 0 : i32
    %c0_i32_0 = arith.constant 0 : i32
    %c0_i32_1 = arith.constant 0 : i32
    return %c0_i32, %c0_i32_0 : i32, i32
  }
  func.func @transform_5(%arg0: i32) -> (i32, i32) {
    %c0_i32 = arith.constant 0 : i32
    %c0_i32_0 = arith.constant 0 : i32
    %c0_i32_1 = arith.constant 0 : i32
    return %c0_i32, %c0_i32_0 : i32, i32
  }
  func.func @transform_6(%arg0: i32) -> (i32, i32) {
    %c0_i32 = arith.constant 0 : i32
    %c0_i32_0 = arith.constant 0 : i32
    %c0_i32_1 = arith.constant 0 : i32
    return %c0_i32, %c0_i32_0 : i32, i32
  }
  func.func @transform_7(%arg0: i32) -> (i32, i32) {
    %c0_i32 = arith.constant 0 : i32
    %c0_i32_0 = arith.constant 0 : i32
    return %arg0, %c0_i32 : i32, i32
  }
}

</mosaic_0001>

<bundles_post_ra>
// kernel: probnn_forward.1
= control target key start
LH: loop header
LB: loop body
LE: loop exit
PB: predicated region body
PF: predicated region fallthrough
CT: control target
= control target key end

     0   :  { %12 = vsyncpa [#allocation3], 0  ;;  %s630_s0 = inlined_call_operand.vmem [shape: bf16[8,128], index: 0, kind: input, shape index: {}]   ;;  %s631_s1 = inlined_call_operand.hbm [shape: bf16[128,128], index: 1, kind: input, shape index: {}]   ;;  %s632_s2 = inlined_call_operand.vmem [shape: f32[1,128], index: 2, kind: input, shape index: {}]   ;;  %s633_s3 = inlined_call_operand.hbm [shape: bf16[128,128], index: 3, kind: input, shape index: {}]   ;;  %s634_s4 = inlined_call_operand.vmem [shape: f32[1,128], index: 4, kind: input, shape index: {}]   ;;  %s635_s5 = inlined_call_operand.hbm [shape: bf16[128,128], index: 5, kind: input, shape index: {}]   ;;  %s636_s6 = inlined_call_operand.vmem [shape: f32[1,128], index: 6, kind: input, shape index: {}]   ;;  %s637_s7 = inlined_call_operand.vmem [shape: f32[8,128], index: 7, kind: output, shape index: {}]  }
   0x1   :  { %13 = vsyncpa [#allocation5], 0  ;;  %s35_s26 = sshll.u32 %s633_s3, 4  ;;  %s561_s27 = smov [#allocation4]   ;;  %s36_s26 = int_to_ptr.hbm [resolvable:$true] %s35_s26 }
   0x2   :  { %s37_s28 = sshll.u32 %s561_s27, 4  ;;  %s20_s8 = sshll.u32 %s631_s1, 4  ;;  %s38_s28 = int_to_ptr.vmem [resolvable:$true] %s37_s28  ;;  %s21_s8 = int_to_ptr.hbm [resolvable:$true] %s20_s8 }
   0x3   :  { %s562_s9 = smov 64   ;;  %s563_s10 = smov 4  }
   0x4   :  { %43 = dma.hbm_to_vmem [thread:$0]  %s36_s26, 1024, %s38_s28, [#allocation5], %s562_s9, %s562_s9, %s563_s10  }
   0x5   :  { %s564_s11 = smov [#allocation2]   ;;  %s50_s15 = sshll.u32 %s635_s5, 4  ;;  %s51_s15 = int_to_ptr.hbm [resolvable:$true] %s50_s15 }
   0x6   :  { %s22_s12 = sshll.u32 %s564_s11, 4  ;;  %s565_s3 = smov [#allocation6]   ;;  %s23_s12 = int_to_ptr.vmem [resolvable:$true] %s22_s12 }
   0x7   :  { %28 = dma.hbm_to_vmem [thread:$0]  %s21_s8, 1024, %s23_s12, [#allocation3], %s562_s9, %s562_s9, %s563_s10  }
   0x8   :  { %s52_s16 = sshll.u32 %s565_s3, 4  ;;  %s53_s16 = int_to_ptr.vmem [resolvable:$true] %s52_s16 }
   0x9   :  { %58 = dma.hbm_to_vmem [thread:$0]  %s51_s15, 1024, %s53_s16, [#allocation5], %s562_s9, %s562_s9, %s563_s10  }
   0xa   :  { %557 = dma.done.wait [#allocation3], 1024  }
   0xb   :  { %558 = vsyncadd [#allocation3], 4294966272 }
   0xc   :  { %559 = dma.done.wait [#allocation5], 2048  }
   0xd   :  { %560 = vsyncadd [#allocation5], 4294965248  ;;  %v452_v0 = vld [vmem:[#allocation2 + $0x38] sm:$0xff]  ;;  %v451_v1 = vld [vmem:[#allocation2 + $0x30] sm:$0xff] }
   0xe   :  { %142 = vmatpush.bf16.msra.mxu0 %v452_v0  ;;  %v460_v2 = vld [vmem:[#allocation4 + $0x38] sm:$0xff]  ;;  %v459_v3 = vld [vmem:[#allocation4 + $0x30] sm:$0xff]  ;;  %v450_v4 = vld [vmem:[#allocation2 + $0x28] sm:$0xff] }
   0xf   :  { %230 = vmatpush.bf16.msra.mxu1 %v460_v2  ;;  %v458_v5 = vld [vmem:[#allocation4 + $0x28] sm:$0xff]  ;;  %v449_v6 = vld [vmem:[#allocation2 + $0x20] sm:$0xff]  ;;  %v448_v7 = vld [vmem:[#allocation2 + $0x18] sm:$0xff] }
  0x10   :  { %v447_v8 = vld [vmem:[#allocation2 + $0x10] sm:$0xff]  ;;  %v446_v9 = vld [vmem:[#allocation2 + $0x8] sm:$0xff]  ;;  %v445_v10 = vld [vmem:[#allocation2] sm:$0xff] }
  0x11   :  { %v73_v11 = vld [vmem:[%s630_s0] sm:$0xf]  ;;  %v456_v13 = vld [vmem:[#allocation4 + $0x18] sm:$0xff]  ;;  %v455_v14 = vld [vmem:[#allocation4 + $0x10] sm:$0xff] }
  0x12   :  { %143 = vmatpush.bf16.msra.mxu0 %v451_v1  ;;  %v457_v12 = vld [vmem:[#allocation4 + $0x20] sm:$0xff]  ;;  %v454_v15 = vld [vmem:[#allocation4 + $0x8] sm:$0xff]  ;;  %v468_v17 = vld [vmem:[#allocation6 + $0x38] sm:$0xff] }
  0x13   :  { %231 = vmatpush.bf16.msra.mxu1 %v459_v3  ;;  %v453_v16 = vld [vmem:[#allocation4] sm:$0xff]  ;;  %318 = vmatpush.bf16.msra.mxu2 %v468_v17  ;;  %v467_v18 = vld [vmem:[#allocation6 + $0x30] sm:$0xff]  ;;  %v466_v19 = vld [vmem:[#allocation6 + $0x28] sm:$0xff] }
  0x14   :  { %v474_v20 = vld [vmem:[%s632_s2] ss:$0 sm:$0xff]  ;;  %v464_v31 = vld [vmem:[#allocation6 + $0x18] sm:$0xff]  ;;  %v463_v32 = vld [vmem:[#allocation6 + $0x10] sm:$0xff] }
  0x15   :  { %v465_v30 = vld [vmem:[#allocation6 + $0x20] sm:$0xff]  ;;  %v462_v33 = vld [vmem:[#allocation6 + $0x8] sm:$0xff] }
  0x16   :  { %144 = vmatpush.bf16.msra.mxu0 %v450_v4  ;;  %v461_v34 = vld [vmem:[#allocation6] sm:$0xff] }
  0x17   :  { %232 = vmatpush.bf16.msra.mxu1 %v458_v5  ;;  %319 = vmatpush.bf16.msra.mxu2 %v467_v18  ;;  %v475_v35 = vld [vmem:[%s634_s4] ss:$0 sm:$0xff] }
  0x18   :  { %v476_v45 = vld [vmem:[%s636_s6] ss:$0 sm:$0xff] }
  0x1a   :  { %145 = vmatpush.bf16.msra.mxu0 %v449_v6 }
  0x1b   :  { %233 = vmatpush.bf16.msra.mxu1 %v457_v12  ;;  %320 = vmatpush.bf16.msra.mxu2 %v466_v19 }
  0x1e   :  { %146 = vmatpush.bf16.msra.mxu0 %v448_v7 }
  0x1f   :  { %234 = vmatpush.bf16.msra.mxu1 %v456_v13  ;;  %321 = vmatpush.bf16.msra.mxu2 %v465_v30 }
  0x22   :  { %147 = vmatpush.bf16.msra.mxu0 %v447_v8 }
  0x23   :  { %235 = vmatpush.bf16.msra.mxu1 %v455_v14  ;;  %322 = vmatpush.bf16.msra.mxu2 %v464_v31 }
  0x26   :  { %148 = vmatpush.bf16.msra.mxu0 %v446_v9 }
  0x27   :  { %236 = vmatpush.bf16.msra.mxu1 %v454_v15  ;;  %323 = vmatpush.bf16.msra.mxu2 %v463_v32 }
  0x2a   :  { %149 = vmatpush.bf16.msra.mxu0 %v445_v10 }
  0x2b   :  { %237 = vmatpush.bf16.msra.mxu1 %v453_v16  ;;  %324 = vmatpush.bf16.msra.mxu2 %v462_v33 }
  0x2d   :  { %150 = vmatmul.bf16.vlgmr.msra.gmra.mxu0 %v73_v11 }
  0x2f   :  { %325 = vmatpush.bf16.msra.mxu2 %v461_v34 }
  0xaa   :  { %v151_v21 = vpop.f32.mrf.mxu0 }
  0xab   :  { %v152_v22 = vadd.f32 %v474_v20, %v151_v21 }
  0xad   :  { %v156_v23 = vmin.f32 %v152_v22, 0.0  ;;  %vm155_vm0 = vcmp.gt.f32.partialorder %v152_v22, 0.0 }
  0xaf   :  { %v157_v24 = vmul.f32 1.442695, %v156_v23 }
  0xb1   :  { %477 = vpow2.f32 %v157_v24 }
  0xb2   :  { %v153_v25 = vpop.f32.mrf.mxu0 }
  0xb7   :  { %v478_v26 = vpop.eup %477 }
  0xb8   :  { %v379_v27 = vadd.f32 -1.0, %v478_v26 }
  0xba   :  { %v160_v28 = vsel %vm155_vm0, %v152_v22, %v379_v27 }
  0xbb   :  { %v161_v29 = vpack.c.bf16 %v160_v28, %v160_v28 }
  0xbd   :  { %238 = vmatmul.bf16.vlgmr.msra.gmra.mxu1 %v161_v29 }
 0x13a   :  { %v239_v36 = vpop.f32.mrf.mxu1 }
 0x13b   :  { %v240_v37 = vadd.f32 %v475_v35, %v239_v36 }
 0x13d   :  { %v244_v38 = vmin.f32 %v240_v37, 0.0  ;;  %vm243_vm1 = vcmp.gt.f32.partialorder %v240_v37, 0.0 }
 0x13f   :  { %v245_v39 = vmul.f32 1.442695, %v244_v38 }
 0x141   :  { %479 = vpow2.f32 %v245_v39 }
 0x142   :  { %v241_v40 = vpop.f32.mrf.mxu1 }
 0x147   :  { %v480_v41 = vpop.eup %479 }
 0x148   :  { %v412_v42 = vadd.f32 -1.0, %v480_v41 }
 0x14a   :  { %v248_v43 = vsel %vm243_vm1, %v240_v37, %v412_v42 }
 0x14b   :  { %v249_v44 = vpack.c.bf16 %v248_v43, %v248_v43 }
 0x14d   :  { %326 = vmatmul.bf16.vlgmr.msra.gmra.mxu2 %v249_v44 }
 0x1d0   :  { %v327_v46 = vpop.f32.mrf.mxu2 }
 0x1d1   :  { %v328_v47 = vadd.f32 %v476_v45, %v327_v46 }
 0x1d3   :  { %331 = vmax.xlane.f32.xlu0 %v328_v47 }
 0x1d8   :  { %v329_v48 = vpop.f32.mrf.mxu2 }
 0x246   :  { %v332_v49 = vpop.xlane.xlu0 %331 }
 0x247   :  { %v333_v50 = vsub.f32 %v328_v47, %v332_v49 }
 0x249   :  { %v334_v51 = vmul.f32 1.442695, %v333_v50 }
 0x24b   :  { %481 = vpow2.f32 %v334_v51 }
 0x251   :  { %v482_v52 = vpop.eup %481 }
 0x252   :  { %336 = vadd.xlane.f32.xlu0 %v482_v52 }
 0x2c5   :  { %v337_v53 = vpop.xlane.xlu0 %336 }
 0x2c6   :  { %483 = vrcp.f32 %v337_v53 }
 0x2cc   :  { %v484_v54 = vpop.eup %483 }
 0x2cd   :  { %v339_v55 = vmul.f32 %v484_v54, %v482_v52 }
 0x2cf   :  { %340 = vst [vmem:[%s637_s7] sm:$0xff] %v339_v55 }
 0x2d0   :  { %345 = vsyncpa [#allocation3], 1 }
 0x2d1   :  { %346 = vsyncpa [#allocation5], 1 }

</bundles_post_ra>
